<compile_context>
chip_gen: v5e
topology: v5e:2x2
jax: 0.10.0
libtpu: 0.0.40
codegen_flags: <defaults>
</compile_context>

<pallas_src>
import functools

import jax
import jax.numpy as jnp
from jax.experimental import pallas as pl
from jax.experimental.pallas import tpu as pltpu

IN_FEATURES = 5
TILE_B = 2048  # batch tile (lane width of one grid step); multiple of 128


def carnet_kernel(xT_ref, w_ref, b_ref, o_ref):
    # xT_ref: (IN, TB)  - batch along lanes (lane-dense)
    # w_ref : (IN, 1)   - collapsed effective weight, resident across the grid
    # b_ref : (1, 1)    - collapsed effective bias, resident across the grid
    # o_ref : (1, TB)   - lane-dense output row (unmasked stores)
    prod = xT_ref[...] * w_ref[...]                 # VPU broadcast multiply
    s = jnp.sum(prod, axis=0, keepdims=True)        # sublane reduce over 5 rows
    o_ref[...] = jnp.tanh(s + b_ref[...])           # EUP tanh, lane-dense store


def collapse_params(params):
    """Precompose the purely-linear 4-layer chain into one (5,1) weight and a
    scalar bias. Done ONCE (hoists all per-call transposes/reshapes)."""
    (w1, b1), (w2, b2), (w3, b3), (w4, b4) = (
        params["layer1"], params["layer2"], params["layer3"], params["out"])
    w_eff = w1.T @ w2.T @ w3.T @ w4.T                       # (5, 1)
    b_eff = ((b1 @ w2.T + b2) @ w3.T + b3) @ w4.T + b4      # (1,)
    return w_eff.astype(jnp.float32), b_eff.reshape(1, 1).astype(jnp.float32)


@functools.partial(jax.jit, static_argnames=("tile_b",))
def carnet_forward(x, w_eff, b_eff, *, tile_b=TILE_B):
    """x: [B, 5] float32 (PyTorch layout). Returns [B, 1] float32."""
    B, in_f = x.shape
    num_tiles = pl.cdiv(B, tile_b)
    b_pad = num_tiles * tile_b

    # Layout plumbing (once per call): batch onto the lane axis, pad to tile.
    xT = x.T
    if b_pad != B:
        xT = jnp.pad(xT, ((0, 0), (0, b_pad - B)))

    out = pl.pallas_call(
        carnet_kernel,
        out_shape=jax.ShapeDtypeStruct((1, b_pad), jnp.float32),
        grid_spec=pltpu.PrefetchScalarGridSpec(
            num_scalar_prefetch=0,
            grid=(num_tiles,),
            in_specs=[
                pl.BlockSpec((in_f, tile_b), lambda i: (0, i)),   # x batch tile
                pl.BlockSpec((in_f, 1), lambda i: (0, 0)),        # resident W_eff
                pl.BlockSpec((1, 1), lambda i: (0, 0)),           # resident b_eff
            ],
            out_specs=pl.BlockSpec((1, tile_b), lambda i: (0, i)),
        ),
        compiler_params=pltpu.CompilerParams(
            dimension_semantics=("parallel",)),  # shards across 2 TCs on v7x
    )(xT, w_eff, b_eff)

    return out[0, :B].reshape(B, 1)


def init_params(key):
    """Deterministic init matching CarNet.__init__ (PyTorch layout: w [out,in], b [out])."""
    dims = [("layer1", 5, 16), ("layer2", 16, 32), ("layer3", 32, 16), ("out", 16, 1)]
    params = {}
    for name, fan_in, fan_out in dims:
        key, kw, kb = jax.random.split(key, 3)
        bound = 1.0 / jnp.sqrt(fan_in)
        w = jax.random.uniform(kw, (fan_out, fan_in), jnp.float32, -bound, bound)
        b = jax.random.uniform(kb, (fan_out,), jnp.float32, -bound, bound)
        params[name] = (w, b)
    return params


def carnet_ref(x, params):
    """Layer-by-layer JAX reference (mirrors the PyTorch forward exactly)."""
    h = x
    for name in ("layer1", "layer2", "layer3", "out"):
        w, b = params[name]
        h = h @ w.T + b
    return jnp.tanh(h)


if __name__ == "__main__":
    key = jax.random.PRNGKey(0)
    key, kx = jax.random.split(key)
    params = init_params(key)
    w_eff, b_eff = collapse_params(params)  # hoisted: computed once, reused per call

    # Main case: batch tiled across the parallel grid (4 tiles of TILE_B rows).
    B = 8192
    x = jax.random.normal(kx, (B, 5), jnp.float32)
    out = jax.block_until_ready(carnet_forward(x, w_eff, b_eff))
    ref = carnet_ref(x, params)
    assert out.shape == (B, 1)
    assert jnp.allclose(out, ref, atol=1e-5, rtol=1e-5), "mismatch vs JAX reference"

    # Ragged batch (exercises the padding path / single tile).
    B2 = 1000
    x2 = jax.random.normal(jax.random.PRNGKey(1), (B2, 5), jnp.float32)
    out2 = jax.block_until_ready(carnet_forward(x2, w_eff, b_eff))
    ref2 = carnet_ref(x2, params)
    assert out2.shape == (B2, 1)
    assert jnp.allclose(out2, ref2, atol=1e-5, rtol=1e-5), "mismatch vs JAX reference (ragged)"

    print("KERNEL_OK")
</pallas_src>

<mosaic_0001>
module attributes {stable_mosaic.version = 11 : i64} {
  func.func @carnet_kernel(%arg0: i32, %arg1: memref<5x2048xf32, #tpu.memory_space<vmem>>, %arg2: memref<5x1xf32, #tpu.memory_space<vmem>>, %arg3: memref<1x1xf32, #tpu.memory_space<vmem>>, %arg4: memref<1x2048xf32, #tpu.memory_space<vmem>>) attributes {dimension_semantics = [#tpu.dimension_semantics<parallel>], iteration_bounds = array<i64: 4>, scalar_prefetch = 0 : i64, scratch_operands = 0 : i64, tpu.core_type = #tpu.core_type<tc>, window_params = [{transform_indices = @transform_0, window_bounds = array<i64: 5, 2048>}, {pipeline_mode = #tpu.pipeline_mode<synchronous>, transform_indices = @transform_1, window_bounds = array<i64: 5, 1>}, {pipeline_mode = #tpu.pipeline_mode<synchronous>, transform_indices = @transform_2, window_bounds = array<i64: 1, 1>}, {transform_indices = @transform_3, window_bounds = array<i64: 1, 2048>}]} {
    %c0 = arith.constant 0 : index
    %c0_0 = arith.constant 0 : index
    %0 = vector.load %arg1[%c0, %c0_0] : memref<5x2048xf32, #tpu.memory_space<vmem>>, vector<5x2048xf32>
    %c0_1 = arith.constant 0 : index
    %c0_2 = arith.constant 0 : index
    %1 = vector.load %arg2[%c0_1, %c0_2] : memref<5x1xf32, #tpu.memory_space<vmem>>, vector<5x1xf32>
    %2 = vector.broadcast %1 : vector<5x1xf32> to vector<5x2048xf32>
    %3 = arith.mulf %0, %2 : vector<5x2048xf32>
    %cst = arith.constant dense<0.000000e+00> : vector<2048xf32>
    %4 = vector.multi_reduction <add>, %3, %cst [0] : vector<5x2048xf32> to vector<2048xf32>
    %5 = vector.shape_cast %4 : vector<2048xf32> to vector<1x2048xf32>
    %c0_3 = arith.constant 0 : index
    %c0_4 = arith.constant 0 : index
    %6 = vector.load %arg3[%c0_3, %c0_4] : memref<1x1xf32, #tpu.memory_space<vmem>>, vector<1x1xf32>
    %7 = vector.broadcast %6 : vector<1x1xf32> to vector<1x2048xf32>
    %8 = arith.addf %5, %7 : vector<1x2048xf32>
    %9 = math.tanh %8 : vector<1x2048xf32>
    %c0_5 = arith.constant 0 : index
    %c0_6 = arith.constant 0 : index
    %10 = vector.load %arg4[%c0_5, %c0_6] : memref<1x2048xf32, #tpu.memory_space<vmem>>, vector<1x2048xf32>
    tpu.vector_store %arg4[%c0_5, %c0_6], %9 {strides = array<i32>} : memref<1x2048xf32, #tpu.memory_space<vmem>>, vector<1x2048xf32>,
    return
  }
  func.func @transform_0(%arg0: i32) -> (i32, i32) {
    %c0_i32 = arith.constant 0 : i32
    %c0_i32_0 = arith.constant 0 : i32
    return %c0_i32, %arg0 : i32, i32
  }
  func.func @transform_1(%arg0: i32) -> (i32, i32) {
    %c0_i32 = arith.constant 0 : i32
    %c0_i32_0 = arith.constant 0 : i32
    %c0_i32_1 = arith.constant 0 : i32
    return %c0_i32, %c0_i32_0 : i32, i32
  }
  func.func @transform_2(%arg0: i32) -> (i32, i32) {
    %c0_i32 = arith.constant 0 : i32
    %c0_i32_0 = arith.constant 0 : i32
    %c0_i32_1 = arith.constant 0 : i32
    return %c0_i32, %c0_i32_0 : i32, i32
  }
  func.func @transform_3(%arg0: i32) -> (i32, i32) {
    %c0_i32 = arith.constant 0 : i32
    %c0_i32_0 = arith.constant 0 : i32
    return %c0_i32, %arg0 : i32, i32
  }
}

</mosaic_0001>

<bundles_post_ra>
// kernel: carnet_forward.1
= control target key start
LH: loop header
LB: loop body
LE: loop exit
PB: predicated region body
PF: predicated region fallthrough
CT: control target
= control target key end

     0   :  { %s935_s0 = inlined_call_operand.hbm [shape: f32[5,8192], index: 0, kind: input, shape index: {}]   ;;  %s936_s1 = inlined_call_operand.vmem [shape: f32[5,1], index: 1, kind: input, shape index: {}]   ;;  %s937_s2 = inlined_call_operand.<no memory space> [shape: f32[1,1], index: 2, kind: input, shape index: {}]   ;;  %s938_s3 = inlined_call_operand.hbm [shape: f32[1,8192], index: 3, kind: output, shape index: {}]  }
   0x1   :  { %v8_v0 = vstv %s937_s2 }
   0x2   :  { %9 = vst [vmem:[#allocation2] sm:$0x1] %v8_v0 }
   0x3   :  { %10 = vsyncpa [#allocation4], 0 }
   0x4   :  { %12 = vsyncpa [#allocation4 + $0x1], 0 }
   0x5   :  { %13 = vsyncpa [#allocation5], 0 }
   0x6   :  { %15 = vsyncpa [#allocation5 + $0x1], 0  ;;  %s740_s14 = smov 0   ;;  %s742_s15 = smov 0  }
   0x7   :  { %s744_s16 = smov 0   ;;  %s746_s17 = smov 0  }
   0x8 LB: > { %s761_s2 = sadd.s32 4294967295, %s714_s17   ;;  %s524_s18 = sadd.s32 4294967294, %s714_s17   ;;  %s714_s17 = sphi %s746_s17, %s947_s17   ;;  %s710_s16 = sphi %s744_s16, %s946_s16   ;;  %s706_s15 = sphi %s742_s15, %s945_s15   ;;  %s702_s14 = sphi %s740_s14, %s944_s14  }
   0x9   : > { %s765_s19 = sadd.s32 1, %s714_s17   ;;  %s28_s20 = sadd.s32 1, %s710_s16 }
   0xa   : > { %s25_s21 = ssub.s32 %s714_s17, %s765_s19  ;;  %p35_p0 = scmp.ne.s32.totalorder %s710_s16, %s706_s15 }
   0xb   : > { %p26_p1 = scmp.eq.s32.totalorder %s25_s21, 0  ;;  %p36_p2 = scmp.eq.s32.totalorder %s714_s17, 0 }
   0xc   : > { %p41_p3 = scmp.ne.s32.totalorder %s706_s15, %s702_s14  ;;  %p42_p4 = scmp.eq.s32.totalorder %s761_s2, 0 }
   0xd   : > { %s777_s22 = scalar_select %p26_p1, %s710_s16, %s28_s20  }
   0xe   : > { %p779_p5 = por %p36_p2, %p35_p0  ;;  %p783_p6 = por %p42_p4, %p41_p3 }
   0xf   : > { %p107_p7 = scmp.eq.s32.totalorder %s761_s2, 3  ;;  %p113_p8 = scmp.eq.s32.totalorder %s524_s18, 3 }
  0x10   : > { %p550_p9 = scmp.lt.s32.totalorder %s714_s17, 4  ;;  %s139_s27 = sand.u32 1, %s710_s16  }
  0x11   : > { %p789_p10 = por %p107_p7, %p35_p0  ;;  %p793_p11 = por %p113_p8, %p41_p3 }
  0x12   : > { %s537_s28 = sshll.u32 %s714_s17, 7  ;;  %s527_s29 = sshll.u32 %s139_s27, 7 }
  0x13   : > { %s148_s5 = scalar_lea.hbm %s935_s0, %s537_s28  ;;  %s143_s7 = scalar_lea.vmem [#allocation3], %s527_s29 }
  0x14   : > { %s150_s6 = sshll.u32 %s148_s5, 4  ;;  %s152_s8 = sshll.u32 %s143_s7, 4  ;;  %s151_s6 = int_to_ptr.hbm [resolvable:$true] %s150_s6  ;;  %s153_s8 = int_to_ptr.vmem [resolvable:$true] %s152_s8 }
  0x15   : > { %p804_p12 = pnand %p550_p9, %p779_p5  ;;  %p530_p13 = scmp.ge.s32.totalorder %s714_s17, 1 }
  0x16   : > { %p157_p0 = scmp.lt.s32.totalorder %s714_s17, 5  ;;  %s140_s10 = scalar_lea.sflag [#allocation4], %s139_s27 }
  0x17   : > { %s618_s11 = sshra.s32 %s151_s6, 4  ;;  %p622_p2 = pneg %p804_p12  ;;  %s619_s11 = int_to_ptr.hbm [resolvable:$true] %s618_s11 }
  0x18   : > { %s620_s12 = scalar_lea.hbm %s619_s11, 128  ;;  %s625_s20 = scalar_lea.hbm %s935_s0, 512 }
  0x19   : > { %p621_p1 = scmp.ne.s32.totalorder %s619_s11, %s620_s12  ;;  %p626_p5 = scmp.lt.s32.totalorder %s619_s11, %s935_s0 }
  0x1a   : > { %p627_p7 = scmp.lt.s32.totalorder %s625_s20, %s620_s12 }
  0x1b   : > { %p623_p3 = pnand %p622_p2, %p621_p1 }
  0x1c   : > { %p628_p8 = por %p627_p7, %p626_p5 }
  0x1d   : > { %p624_p4 = pneg %p623_p3 }
  0x1f   : > { %p629_p9 = pnand %p628_p8, %p624_p4 }
  0x21   : > { %632 = shalt.err (!%p629_p9)
}
  0x22   : > { %545 = dma.hbm_to_vmem [thread:$0]  (!%p804_p12), %s151_s6, 2048, %s153_s8, %s140_s10  }
  0x23   : > { %p158_p1 = pnand %p530_p13, %p157_p0 }
  0x24   : > { %s825_s27 = sand.u32 (!%p158_p1), 1, %s706_s15  }
  0x25   : > { %161 = sbr.rel (%p158_p1) target bundleno = 221 (0xdd), region = 32  ;;  %s531_s28 = sshll.u32 (!%p158_p1), %s825_s27, 7 }
  0x26   : > { %s164_s29 = scalar_lea.sflag (!%p158_p1), [#allocation4], %s825_s27  ;;  %s829_s30 = scalar_lea.vmem (!%p158_p1), [#allocation3], %s531_s28 }
  0x2a   : > { %693 = dma.done.wait (%p783_p6), %s164_s29, 2048  }
  0x2b   : > { %695 = vsyncadd (%p783_p6), %s164_s29, 4294965248  ;;  %v716_v1 = vmov 0   ;;  %v209_v2 = vld [vmem:[%s936_s1] sm:$0x1f]  ;;  %v194_v5 = vld [vmem:[%s829_s30 + $0x8] sm:$0x1f] }
  0x2c   : > { %585 = vset.pattern.permute.xlu0 %v716_v1  ;;  %v344_v3 = vld [vmem:[#allocation2] sm:$0x1]  ;;  %v193_v4 = vld [vmem:[%s829_s30] sm:$0x1f]  ;;  %v195_v6 = vld [vmem:[%s829_s30 + $0x10] sm:$0x1f] }
  0x2d   : > { %212 = vperm.xlu0 %585, %v209_v2   ;;  %v196_v7 = vld [vmem:[%s829_s30 + $0x18] sm:$0x1f]  ;;  %v197_v9 = vld [vmem:[%s829_s30 + $0x20] sm:$0x1f]  ;;  %vm231_vm0 = vcmask 1044480   ;;  %vm413_vm1 = vcmask 1040384  }
  0x2e   : > { %v198_v14 = vld [vmem:[%s829_s30 + $0x28] sm:$0x1f]  ;;  %v199_v15 = vld [vmem:[%s829_s30 + $0x30] sm:$0x1f]  ;;  %v200_v17 = vld [vmem:[%s829_s30 + $0x38] sm:$0x1f] }
  0x2f   : > { %v201_v30 = vld [vmem:[%s829_s30 + $0x40] sm:$0x1f]  ;;  %v202_v33 = vld [vmem:[%s829_s30 + $0x48] sm:$0x1f]  ;;  %v203_v34 = vld [vmem:[%s829_s30 + $0x50] sm:$0x1f] }
  0x30   : > { %v204_v37 = vld [vmem:[%s829_s30 + $0x58] sm:$0x1f]  ;;  %v205_v38 = vld [vmem:[%s829_s30 + $0x60] sm:$0x1f]  ;;  %v206_v42 = vld [vmem:[%s829_s30 + $0x68] sm:$0x1f] }
  0x31   : > { %v207_v43 = vld [vmem:[%s829_s30 + $0x70] sm:$0x1f]  ;;  %v208_v47 = vld [vmem:[%s829_s30 + $0x78] sm:$0x1f]  ;;  %vm415_vm2 = vcmask 1042434   ;;  %vm417_vm3 = vcmask 1041408  }
  0x32   : > { %vm419_vm4 = vcmask 1044484   ;;  %s532_s24 = sshll.u32 %s825_s27, 4  ;;  %vm421_vm5 = vcmask 1046534   ;;  %vm423_vm6 = vcmask 1045508   ;;  %vm425_vm7 = vcmask 1043456   ;;  %s534_s6 = sshll.u32 %s761_s2, 4 }
  0x33   : > { %s190_s7 = scalar_lea.vmem [#allocation6], %s532_s24  ;;  %s449_s10 = scalar_lea.hbm %s938_s3, %s534_s6 }
  0x34   : > { %s451_s2 = sshll.u32 %s190_s7, 4  ;;  %s453_s11 = sshll.u32 %s449_s10, 4  ;;  %s452_s2 = int_to_ptr.vmem [resolvable:$true] %s451_s2  ;;  %s454_s11 = int_to_ptr.hbm [resolvable:$true] %s453_s11 }
  0x35   : > { %347 = vperm.xlu0 %585, %v344_v3   ;;  %s439_s12 = scalar_lea.sflag [#allocation5], %s825_s27  ;;  %s662_s13 = sshra.s32 %s454_s11, 4  ;;  %s663_s13 = int_to_ptr.hbm [resolvable:$true] %s662_s13 }
  0x36   : > { %s664_s18 = scalar_lea.hbm %s663_s13, 16  ;;  %s668_s23 = scalar_lea.hbm %s938_s3, 64 }
  0x37   : > { %p665_p6 = scmp.ne.s32.totalorder %s663_s13, %s664_s18  ;;  %p669_p0 = scmp.lt.s32.totalorder %s663_s13, %s938_s3 }
  0x38   : > { %p670_p2 = scmp.lt.s32.totalorder %s668_s23, %s664_s18 }
  0x39   : > { %p666_p12 = pnand %p665_p6, %p789_p10 }
  0x3a   : > { %p671_p3 = por %p670_p2, %p669_p0 }
  0x3b   : > { %p667_p13 = pneg %p666_p12 }
  0x3d   : > { %p672_p4 = pnand %p671_p3, %p667_p13 }
  0x9f   : > { %v213_v8 = vpop.permute.xlu0 %212 }
  0xa0   : > { %v215_v10 = vmul.f32 %v213_v8, %v193_v4  ;;  %v216_v11 = vmul.f32 %v213_v8, %v194_v5  ;;  %v217_v12 = vmul.f32 %v213_v8, %v195_v6  ;;  %v218_v13 = vmul.f32 %v213_v8, %v196_v7 }
  0xa1   : > { %v219_v16 = vmul.f32 %v213_v8, %v197_v9  ;;  %v220_v22 = vmul.f32 %v213_v8, %v198_v14  ;;  %v221_v23 = vmul.f32 %v213_v8, %v199_v15  ;;  %v222_v28 = vmul.f32 %v213_v8, %v200_v17 }
  0xa2   : > { %v232_v18 = vsel %vm231_vm0, %v215_v10, 0.0  ;;  %v239_v19 = vsel %vm231_vm0, %v216_v11, 0.0  ;;  %v246_v20 = vsel %vm231_vm0, %v217_v12, 0.0  ;;  %v253_v21 = vsel %vm231_vm0, %v218_v13, 0.0 }
  0xa3   : > { %v233_v24 = vrot.slane %v232_v18, 4  ;;  %v240_v25 = vrot.slane %v239_v19, 4  ;;  %v247_v26 = vrot.slane %v246_v20, 4  ;;  %v254_v27 = vrot.slane %v253_v21, 4 }
  0xa4   : > { %v260_v29 = vsel %vm231_vm0, %v219_v16, 0.0  ;;  %v267_v35 = vsel %vm231_vm0, %v220_v22, 0.0  ;;  %v274_v36 = vsel %vm231_vm0, %v221_v23, 0.0  ;;  %v223_v44 = vmul.f32 %v213_v8, %v201_v30 }
  0xa5   : > { %v234_v31 = vadd.f32 %v233_v24, %v232_v18  ;;  %v241_v32 = vadd.f32 %v240_v25, %v239_v19  ;;  %v248_v39 = vadd.f32 %v247_v26, %v246_v20  ;;  %v255_v40 = vadd.f32 %v254_v27, %v253_v21 }
  0xa6   : > { %v261_v41 = vrot.slane %v260_v29, 4  ;;  %v281_v45 = vsel %vm231_vm0, %v222_v28, 0.0  ;;  %v268_v50 = vrot.slane %v267_v35, 4  ;;  %v275_v51 = vrot.slane %v274_v36, 4 }
  0xa7   : > { %v348_v46 = vpop.permute.xlu0 %347  ;;  %v235_v48 = vrot.slane %v234_v31, 2  ;;  %v242_v49 = vrot.slane %v241_v32, 2  ;;  %v224_v52 = vmul.f32 %v213_v8, %v202_v33  ;;  %v225_v53 = vmul.f32 %v213_v8, %v203_v34 }
  0xa8   : > { %v226_v54 = vmul.f32 %v213_v8, %v204_v37  ;;  %v227_v55 = vmul.f32 %v213_v8, %v205_v38  ;;  %v249_v56 = vrot.slane %v248_v39, 2  ;;  %v256_v57 = vrot.slane %v255_v40, 2 }
  0xa9   : > { %v262_v58 = vadd.f32 %v261_v41, %v260_v29  ;;  %v282_v59 = vrot.slane %v281_v45, 4  ;;  %v862_v60 = vperm.slane %v348_v46, 0  ;;  %v228_v61 = vmul.f32 %v213_v8, %v206_v42 }
  0xaa   : > { %v229_v62 = vmul.f32 %v213_v8, %v207_v43  ;;  %v230_v63 = vmul.f32 %v213_v8, %v208_v47  ;;  %v236_v0 = vadd.f32 %v235_v48, %v234_v31  ;;  %v243_v1 = vadd.f32 %v242_v49, %v241_v32 }
  0xab   : > { %v269_v2 = vadd.f32 %v268_v50, %v267_v35  ;;  %v276_v3 = vadd.f32 %v275_v51, %v274_v36  ;;  %v288_v4 = vsel %vm231_vm0, %v223_v44, 0.0  ;;  %v295_v5 = vsel %vm231_vm0, %v224_v52, 0.0 }
  0xac   : > { %v302_v6 = vsel %vm231_vm0, %v225_v53, 0.0  ;;  %v309_v7 = vsel %vm231_vm0, %v226_v54, 0.0  ;;  %v250_v9 = vadd.f32 %v249_v56, %v248_v39  ;;  %v257_v10 = vadd.f32 %v256_v57, %v255_v40 }
  0xad   : > { %v263_v11 = vrot.slane %v262_v58, 2  ;;  %v283_v12 = vadd.f32 %v282_v59, %v281_v45  ;;  %v289_v13 = vrot.slane %v288_v4, 4  ;;  %v296_v14 = vrot.slane %v295_v5, 4 }
  0xae   : > { %v303_v15 = vrot.slane %v302_v6, 4  ;;  %v310_v8 = vrot.slane %v309_v7, 4  ;;  %v270_v16 = vrot.slane %v269_v2, 2  ;;  %v316_v17 = vsel %vm231_vm0, %v227_v55, 0.0 }
  0xaf   : > { %v323_v18 = vsel %vm231_vm0, %v228_v61, 0.0  ;;  %v330_v19 = vsel %vm231_vm0, %v229_v62, 0.0  ;;  %v277_v20 = vrot.slane %v276_v3, 2  ;;  %v290_v21 = vadd.f32 %v289_v13, %v288_v4 }
  0xb0   : > { %v297_v22 = vadd.f32 %v296_v14, %v295_v5  ;;  %v304_v23 = vadd.f32 %v303_v15, %v302_v6  ;;  %v317_v24 = vrot.slane %v316_v17, 4  ;;  %v324_v25 = vrot.slane %v323_v18, 4 }
  0xb1   : > { %v331_v26 = vrot.slane %v330_v19, 4  ;;  %v337_v27 = vsel %vm231_vm0, %v230_v63, 0.0  ;;  %v237_v28 = vrot.slane %v236_v0, 1  ;;  %v284_v29 = vrot.slane %v283_v12, 2 }
  0xb2   : > { %v291_v30 = vrot.slane %v290_v21, 2  ;;  %v311_v31 = vadd.f32 %v310_v8, %v309_v7  ;;  %v264_v32 = vadd.f32 %v263_v11, %v262_v58  ;;  %v318_v33 = vadd.f32 %v317_v24, %v316_v17 }
  0xb3   : > { %v325_v34 = vadd.f32 %v324_v25, %v323_v18  ;;  %v338_v35 = vrot.slane %v337_v27, 4  ;;  %v244_v36 = vrot.slane %v243_v1, 1  ;;  %v271_v37 = vadd.f32 %v270_v16, %v269_v2 }
  0xb4   : > { %v298_v38 = vrot.slane %v297_v22, 2  ;;  %v305_v39 = vrot.slane %v304_v23, 2  ;;  %v251_v40 = vrot.slane %v250_v9, 1  ;;  %v278_v41 = vadd.f32 %v277_v20, %v276_v3 }
  0xb5   : > { %v332_v42 = vadd.f32 %v331_v26, %v330_v19  ;;  %v339_v43 = vadd.f32 %v338_v35, %v337_v27  ;;  %v258_v44 = vrot.slane %v257_v10, 1  ;;  %v285_v45 = vadd.f32 %v284_v29, %v283_v12 }
  0xb6   : > { %v292_v46 = vadd.f32 %v291_v30, %v290_v21  ;;  %v312_v47 = vrot.slane %v311_v31, 2  ;;  %v238_v48 = vadd.f32 %v237_v28, %v236_v0  ;;  %v265_v49 = vrot.slane %v264_v32, 1 }
  0xb7   : > { %v319_v50 = vrot.slane %v318_v33, 2  ;;  %v326_v51 = vrot.slane %v325_v34, 2  ;;  %v245_v52 = vadd.f32 %v244_v36, %v243_v1  ;;  %v272_v53 = vrot.slane %v271_v37, 1 }
  0xb8   : > { %v299_v54 = vadd.f32 %v298_v38, %v297_v22  ;;  %v306_v55 = vadd.f32 %v305_v39, %v304_v23  ;;  %v252_v56 = vadd.f32 %v251_v40, %v250_v9  ;;  %v279_v57 = vrot.slane %v278_v41, 1 }
  0xb9   : > { %v333_v58 = vrot.slane %v332_v42, 2  ;;  %v340_v59 = vrot.slane %v339_v43, 2  ;;  %v259_v61 = vadd.f32 %v258_v44, %v257_v10  ;;  %v286_v62 = vrot.slane %v285_v45, 1 }
  0xba   : > { %v293_v63 = vrot.slane %v292_v46, 1  ;;  %v313_v2 = vadd.f32 %v312_v47, %v311_v31  ;;  %v266_v3 = vadd.f32 %v265_v49, %v264_v32  ;;  %v320_v4 = vadd.f32 %v319_v50, %v318_v33 }
  0xbb   : > { %v327_v5 = vadd.f32 %v326_v51, %v325_v34  ;;  %v351_v0 = vadd.f32 %v862_v60, %v238_v48  ;;  %v273_v6 = vadd.f32 %v272_v53, %v271_v37  ;;  %v300_v7 = vrot.slane %v299_v54, 1 }
  0xbc   : > { %v307_v11 = vrot.slane %v306_v55, 1  ;;  %v352_v1 = vadd.f32 %v862_v60, %v245_v52  ;;  %v280_v12 = vadd.f32 %v279_v57, %v278_v41  ;;  %v334_v13 = vadd.f32 %v333_v58, %v332_v42 }
  0xbd   : > { %v341_v9 = vadd.f32 %v340_v59, %v339_v43  ;;  %v353_v14 = vadd.f32 %v862_v60, %v252_v56  ;;  %v287_v15 = vadd.f32 %v286_v62, %v285_v45  ;;  %v294_v10 = vadd.f32 %v293_v63, %v292_v46 }
  0xbe   : > { %v314_v8 = vrot.slane %v313_v2, 1  ;;  %v354_v16 = vadd.f32 %v862_v60, %v259_v61  ;;  %v321_v17 = vrot.slane %v320_v4, 1  ;;  %v328_v18 = vrot.slane %v327_v5, 1 }
  0xbf   : > { %v355_v19 = vadd.f32 %v862_v60, %v266_v3  ;;  %586 = vtanh.f32 %v351_v0  ;;  %v301_v20 = vadd.f32 %v300_v7, %v299_v54  ;;  %v308_v21 = vadd.f32 %v307_v11, %v306_v55 }
  0xc0   : > { %v356_v22 = vadd.f32 %v862_v60, %v273_v6  ;;  %588 = vtanh.f32 %v352_v1  ;;  %v335_v23 = vrot.slane %v334_v13, 1  ;;  %v342_v24 = vrot.slane %v341_v9, 1 }
  0xc1   : > { %v357_v25 = vadd.f32 %v862_v60, %v280_v12  ;;  %590 = vtanh.f32 %v353_v14  ;;  %v315_v26 = vadd.f32 %v314_v8, %v313_v2  ;;  %v358_v27 = vadd.f32 %v862_v60, %v287_v15 }
  0xc2   : > { %592 = vtanh.f32 %v354_v16  ;;  %v322_v28 = vadd.f32 %v321_v17, %v320_v4  ;;  %v329_v29 = vadd.f32 %v328_v18, %v327_v5  ;;  %v359_v30 = vadd.f32 %v862_v60, %v294_v10 }
  0xc3   : > { %594 = vtanh.f32 %v355_v19  ;;  %v360_v31 = vadd.f32 %v862_v60, %v301_v20  ;;  %v336_v33 = vadd.f32 %v335_v23, %v334_v13  ;;  %v343_v34 = vadd.f32 %v342_v24, %v341_v9 }
  0xc4   : > { %596 = vtanh.f32 %v356_v22  ;;  %v361_v35 = vadd.f32 %v862_v60, %v308_v21  ;;  %v362_v37 = vadd.f32 %v862_v60, %v315_v26  ;;  %v363_v39 = vadd.f32 %v862_v60, %v322_v28 }
  0xc5   : > { %v587_v32 = vpop.eup %586  ;;  %598 = vtanh.f32 %v357_v25  ;;  %v364_v40 = vadd.f32 %v862_v60, %v329_v29  ;;  %v365_v45 = vadd.f32 %v862_v60, %v336_v33  ;;  %v366_v46 = vadd.f32 %v862_v60, %v343_v34 }
  0xc6   : > { %v589_v36 = vpop.eup %588  ;;  %600 = vtanh.f32 %v358_v27 }
  0xc7   : > { %v591_v38 = vpop.eup %590  ;;  %602 = vtanh.f32 %v359_v30  ;;  %v399_v41 = vrot.slane %v589_v36, 7 }
  0xc8   : > { %v593_v42 = vpop.eup %592  ;;  %604 = vtanh.f32 %v360_v31  ;;  %v400_v43 = vrot.slane %v591_v38, 6 }
  0xc9   : > { %v595_v44 = vpop.eup %594  ;;  %606 = vtanh.f32 %v361_v35  ;;  %v401_v47 = vrot.slane %v593_v42, 5  ;;  %v414_v52 = vsel %vm413_vm1, %v587_v32, %v399_v41 }
  0xca   : > { %v597_v48 = vpop.eup %596  ;;  %608 = vtanh.f32 %v362_v37  ;;  %v402_v49 = vrot.slane %v595_v44, 4 }
  0xcb   : > { %v599_v50 = vpop.eup %598  ;;  %610 = vtanh.f32 %v363_v39  ;;  %v403_v51 = vrot.slane %v597_v48, 3  ;;  %v416_v53 = vsel %vm415_vm2, %v400_v43, %v401_v47 }
  0xcc   : > { %v601_v54 = vpop.eup %600  ;;  %612 = vtanh.f32 %v364_v40  ;;  %v404_v55 = vrot.slane %v599_v50, 2  ;;  %v418_v59 = vsel %vm417_vm3, %v414_v52, %v416_v53 }
  0xcd   : > { %v603_v60 = vpop.eup %602  ;;  %614 = vtanh.f32 %v365_v45  ;;  %v405_v56 = vrot.slane %v601_v54, 1  ;;  %v420_v57 = vsel %vm419_vm4, %v402_v49, %v403_v51 }
  0xce   : > { %v605_v58 = vpop.eup %604  ;;  %616 = vtanh.f32 %v366_v46 }
  0xcf   : > { %v607_v61 = vpop.eup %606  ;;  %v406_v62 = vrot.slane %v605_v58, 7  ;;  %v422_v63 = vsel %vm421_vm5, %v404_v55, %v405_v56 }
  0xd0   : > { %v609_v2 = vpop.eup %608  ;;  %v407_v3 = vrot.slane %v607_v61, 6  ;;  %v424_v4 = vsel %vm423_vm6, %v420_v57, %v422_v63 }
  0xd1   : > { %v611_v5 = vpop.eup %610  ;;  %v408_v0 = vrot.slane %v609_v2, 5  ;;  %v426_v6 = vsel %vm425_vm7, %v418_v59, %v424_v4  ;;  %v427_v13 = vsel %vm413_vm1, %v603_v60, %v406_v62 }
  0xd2   : > { %v613_v7 = vpop.eup %612  ;;  %v409_v11 = vrot.slane %v611_v5, 4  ;;  %436 = vst [vmem:[%s190_s7] sm:$0xff] %v426_v6 }
  0xd3   : > { %v615_v1 = vpop.eup %614  ;;  %v410_v12 = vrot.slane %v613_v7, 3  ;;  %v428_v9 = vsel %vm415_vm2, %v407_v3, %v408_v0 }
  0xd4   : > { %v617_v14 = vpop.eup %616  ;;  %v411_v15 = vrot.slane %v615_v1, 2  ;;  %v429_v16 = vsel %vm417_vm3, %v427_v13, %v428_v9 }
  0xd5   : > { %v412_v10 = vrot.slane %v617_v14, 1  ;;  %v430_v8 = vsel %vm419_vm4, %v409_v11, %v410_v12 }
  0xd7   : > { %v431_v17 = vsel %vm421_vm5, %v411_v15, %v412_v10 }
  0xd8   : > { %v432_v18 = vsel %vm423_vm6, %v430_v8, %v431_v17 }
  0xd9   : > { %v433_v19 = vsel %vm425_vm7, %v429_v16, %v432_v18 }
  0xda   : > { %437 = vst [vmem:[%s190_s7 + $0x8] sm:$0xff] %v433_v19 }
  0xdb   : > { %675 = shalt.err (!%p672_p4)
}
  0xdc   : > { %540 = dma.vmem_to_hbm [thread:$0]  (%p789_p10), %s452_s2, 256, %s454_s11, %s439_s12  }
  0xdd PF: > { %p551_p5 = scmp.ge.s32.totalorder %s714_s17, 2  ;;  %s465_s27 = sand.u32 1, %s702_s14  }
  0xde   : > { %s466_s30 = scalar_lea.sflag [#allocation5], %s465_s27 }
  0xdf   : > { %p547_p7 = pnand %p551_p5, %p793_p11 }
  0xe1   : > { %p548_p8 = pneg %p547_p7 }
  0xe3   : > { %697 = dma.done.wait (%p548_p8), %s466_s30, 256  }
  0xe4   : > { %699 = vsyncadd (%p548_p8), %s466_s30, 4294967040  ;;  %p18_p9 = scmp.ge.s32.totalorder %s765_s19, 6   ;;  %s944_s14 = smov %s706_s15 }
  0xe5   : > { %s945_s15 = smov %s710_s16  ;;  %s946_s16 = smov %s777_s22 }
  0xe6   : > { %s947_s17 = smov %s765_s19  ;;  %20 = sbr.rel (!%p18_p9) target bundleno = 8 (0x8), region = 77 }
  0xeb   :  { %472 = vsyncpa [#allocation4], 1 }
  0xec   :  { %474 = vsyncpa [#allocation4 + $0x1], 1 }
  0xed   :  { %475 = vsyncpa [#allocation5], 1 }
  0xee   :  { %477 = vsyncpa [#allocation5 + $0x1], 1 }

</bundles_post_ra>
